<compile_context>
chip_gen: v6e
topology: v6e:2x2x1
jax: 0.10.0
libtpu: 0.0.40
codegen_flags: <defaults>
</compile_context>

<pallas_src>
import jax
import jax.numpy as jnp
from jax.experimental import pallas as pl
from jax.experimental.pallas import tpu as pltpu


def _lstm_cell_kernel(x_ref, h_ref, c_ref, wx_ref, wh_ref, b_ref,
                      h_out_ref, c_out_ref):
    # x_ref : (B, D_in) f32          h_ref : (1, D_out) f32 (full, resident)
    # c_ref : (1, tn)   f32 tile
    # wx_ref: (D_in, 4*tn)  bf16     wh_ref: (D_out, 4*tn) bf16
    # b_ref : (1, 4*tn) f32          gate order per tile: [f, i, o, c~]
    tn = c_ref.shape[-1]

    x_bf = x_ref[...].astype(jnp.bfloat16)
    h_bf = h_ref[...].astype(jnp.bfloat16)

    # x-path: (B, 4*tn); h-path computed ONCE as a (1, 4*tn) row.
    zx = jnp.dot(x_bf, wx_ref[...], preferred_element_type=jnp.float32)
    zh = jnp.dot(h_bf, wh_ref[...], preferred_element_type=jnp.float32)
    z = zx + zh + b_ref[...]                      # h & bias broadcast over B

    # 128-aligned static lane slices (tn is a multiple of 128).
    f_t = jax.nn.sigmoid(z[:, 0 * tn:1 * tn])
    i_t = jax.nn.sigmoid(z[:, 1 * tn:2 * tn])
    o_t = jax.nn.sigmoid(z[:, 2 * tn:3 * tn])
    c_tilde = jnp.tanh(z[:, 3 * tn:4 * tn])

    c_new = f_t * c_ref[...] + i_t * c_tilde      # (1, tn) broadcasts over B
    c_out_ref[...] = c_new
    h_out_ref[...] = o_t * jnp.tanh(c_new)


def _tile_gates(w, d_out, tile_n):
    """Permute columns of a (K, 4*D_out) [f|i|o|c~] matrix so that the four
    gate slices of each D_out feature tile are contiguous:
    tile j -> [Wf_j | Wi_j | Wo_j | Wc_j], each tile_n lanes wide."""
    k = w.shape[0]
    nt = d_out // tile_n
    return (w.reshape(k, 4, nt, tile_n)
             .transpose(0, 2, 1, 3)
             .reshape(k, nt * 4 * tile_n))


def lstm_cell(x, h_prev, c_prev, wx, wh, b, *, tile_n=None):
    """Single fused LSTM-cell step.  Returns (h_t, c_t), each (B, D_out)."""
    batch, d_in = x.shape
    d_out = h_prev.shape[-1]
    assert wx.shape == (d_in, 4 * d_out)
    assert wh.shape == (d_out, 4 * d_out)
    assert b.shape == (1, 4 * d_out)
    assert d_in % 128 == 0 and d_out % 128 == 0, (
        "feature dims must be lane-aligned (multiples of 128)")

    if tile_n is None:
        tile_n = min(d_out, 512)
    assert d_out % tile_n == 0 and tile_n % 128 == 0
    num_tiles = d_out // tile_n

    # Pad the batch to the f32 sublane multiple (8).
    pad_b = (-batch) % 8
    if pad_b:
        x = jnp.pad(x, ((0, pad_b), (0, 0)))
    bp = batch + pad_b

    # bf16 weight stream; gate-tile column permutation; bias stays f32.
    wx_t = _tile_gates(wx, d_out, tile_n).astype(jnp.bfloat16)
    wh_t = _tile_gates(wh, d_out, tile_n).astype(jnp.bfloat16)
    b_t = _tile_gates(b, d_out, tile_n)

    # Advisory cost estimate (helps XLA overlap this small kernel).
    flops = 2 * (bp * d_in + d_out) * 4 * d_out + 10 * bp * d_out
    transcendentals = 5 * bp * d_out
    bytes_accessed = ((wx_t.size + wh_t.size) * 2            # bf16 weights
                      + (x.size + b_t.size + h_prev.size + c_prev.size) * 4
                      + 2 * bp * d_out * 4)                  # outputs

    # Explicit scoped-VMEM limit with headroom (v7x has only 64 MiB physical).
    per_tile_w_bytes = (d_in + d_out) * 4 * tile_n * 2       # bf16
    vmem_est = (2 * per_tile_w_bytes                         # double-buffered W tiles
                + bp * d_in * 4                              # resident x
                + 8 * bp * tile_n * 4                        # z slab + gates + outputs
                + 8 * d_out * 4)                             # h/c/bias rows
    vmem_limit = int(min(max(3 * vmem_est, 8 << 20), 48 << 20))

    grid_spec = pltpu.PrefetchScalarGridSpec(
        num_scalar_prefetch=0,
        grid=(num_tiles,),
        in_specs=[
            pl.BlockSpec((bp, d_in), lambda j: (0, 0)),           # x (resident)
            pl.BlockSpec((1, d_out), lambda j: (0, 0)),           # h_prev (resident)
            pl.BlockSpec((1, tile_n), lambda j: (0, j)),          # c_prev tile
            pl.BlockSpec((d_in, 4 * tile_n), lambda j: (0, j)),   # Wx tile
            pl.BlockSpec((d_out, 4 * tile_n), lambda j: (0, j)),  # Wh tile
            pl.BlockSpec((1, 4 * tile_n), lambda j: (0, j)),      # bias tile
        ],
        out_specs=(
            pl.BlockSpec((bp, tile_n), lambda j: (0, j)),         # h_t tile
            pl.BlockSpec((bp, tile_n), lambda j: (0, j)),         # c_t tile
        ),
    )

    h_t, c_t = pl.pallas_call(
        _lstm_cell_kernel,
        out_shape=(jax.ShapeDtypeStruct((bp, d_out), jnp.float32),
                   jax.ShapeDtypeStruct((bp, d_out), jnp.float32)),
        grid_spec=grid_spec,
        compiler_params=pltpu.CompilerParams(
            dimension_semantics=("parallel",),
            vmem_limit_bytes=vmem_limit),
        cost_estimate=pl.CostEstimate(
            flops=flops,
            transcendentals=transcendentals,
            bytes_accessed=bytes_accessed),
    )(x, h_prev, c_prev, wx_t, wh_t, b_t)

    if pad_b:
        h_t = h_t[:batch]
        c_t = c_t[:batch]
    return h_t, c_t


def make_params(key, input_size, output_size):
    """Parameters mathematically identical to the PyTorch module, pre-fused.

    Per gate g in [f, i, o, c~]: nn.Linear W_g (out, in) + bias, nn.Linear
    U_g (out, out) + bias, plus the extra parameter b_g of shape (1, out).
    We pre-transpose to (in, out), concatenate gates along N, and fold the
    three bias terms per gate:
        wx : (input_size,  4 * output_size)
        wh : (output_size, 4 * output_size)
        b  : (1, 4 * output_size)
    """
    keys = jax.random.split(key, 12)
    scale = 0.1
    wx = [scale * jax.random.normal(keys[g], (input_size, output_size),
                                    dtype=jnp.float32) for g in range(4)]
    wh = [scale * jax.random.normal(keys[4 + g], (output_size, output_size),
                                    dtype=jnp.float32) for g in range(4)]
    biases = [
        (scale * jax.random.normal(keys[8 + g], (1, output_size),
                                   dtype=jnp.float32)
         + scale * jax.random.normal(jax.random.fold_in(keys[8 + g], 1),
                                     (1, output_size), dtype=jnp.float32)
         + jax.random.uniform(jax.random.fold_in(keys[8 + g], 2),
                              (1, output_size), dtype=jnp.float32))
        for g in range(4)
    ]
    return (jnp.concatenate(wx, axis=1),
            jnp.concatenate(wh, axis=1),
            jnp.concatenate(biases, axis=1))


def lstm_cell_ref(x, h_prev, c_prev, wx, wh, b):
    """Pure-JAX reference with identical (bf16-weight) precision choices."""
    d_out = h_prev.shape[-1]
    z = (jnp.dot(x.astype(jnp.bfloat16), wx.astype(jnp.bfloat16),
                 preferred_element_type=jnp.float32)
         + jnp.dot(h_prev.astype(jnp.bfloat16), wh.astype(jnp.bfloat16),
                   preferred_element_type=jnp.float32)
         + b)
    f_t = jax.nn.sigmoid(z[:, 0 * d_out:1 * d_out])
    i_t = jax.nn.sigmoid(z[:, 1 * d_out:2 * d_out])
    o_t = jax.nn.sigmoid(z[:, 2 * d_out:3 * d_out])
    c_tilde = jnp.tanh(z[:, 3 * d_out:4 * d_out])
    c_new = f_t * c_prev + i_t * c_tilde
    h_new = o_t * jnp.tanh(c_new)
    return h_new, c_new


if __name__ == "__main__":
    input_size = 128    # lane-aligned (multiple of 128)
    output_size = 256   # lane-aligned; with tile_n=128 -> 2 grid tiles
    batch = 4           # exercises the sublane-padding path (padded to 8)

    key = jax.random.PRNGKey(0)
    k_x, k_p = jax.random.split(key)

    x = jax.random.normal(k_x, (batch, input_size), dtype=jnp.float32)
    # The module initializes its states as zeros of shape (1, output_size).
    h_prev = jnp.zeros((1, output_size), dtype=jnp.float32)
    c_prev = jnp.zeros((1, output_size), dtype=jnp.float32)

    wx, wh, b = make_params(k_p, input_size, output_size)

    h_t, c_t = lstm_cell(x, h_prev, c_prev, wx, wh, b, tile_n=128)
    jax.block_until_ready((h_t, c_t))

    h_ref, c_ref = lstm_cell_ref(x, h_prev, c_prev, wx, wh, b)
    assert h_t.shape == (batch, output_size) and c_t.shape == (batch, output_size)
    assert jnp.allclose(h_t, h_ref, atol=1e-3, rtol=1e-3), "h_t mismatch"
    assert jnp.allclose(c_t, c_ref, atol=1e-3, rtol=1e-3), "c_t mismatch"

    print("KERNEL_OK")
</pallas_src>

<mosaic_0001>
module attributes {stable_mosaic.version = 11 : i64} {
  func.func @_lstm_cell_kernel(%arg0: i32, %arg1: memref<8x128xf32, #tpu.memory_space<vmem>>, %arg2: memref<1x256xf32, #tpu.memory_space<vmem>>, %arg3: memref<1x128xf32, #tpu.memory_space<vmem>>, %arg4: memref<128x512xbf16, #tpu.memory_space<vmem>>, %arg5: memref<256x512xbf16, #tpu.memory_space<vmem>>, %arg6: memref<1x512xf32, #tpu.memory_space<vmem>>, %arg7: memref<8x128xf32, #tpu.memory_space<vmem>>, %arg8: memref<8x128xf32, #tpu.memory_space<vmem>>) attributes {dimension_semantics = [#tpu.dimension_semantics<parallel>], iteration_bounds = array<i64: 2>, scalar_prefetch = 0 : i64, scratch_operands = 0 : i64, tpu.core_type = #tpu.core_type<tc>, window_params = [{pipeline_mode = #tpu.pipeline_mode<synchronous>, transform_indices = @transform_0, window_bounds = array<i64: 8, 128>}, {pipeline_mode = #tpu.pipeline_mode<synchronous>, transform_indices = @transform_1, window_bounds = array<i64: 1, 256>}, {transform_indices = @transform_2, window_bounds = array<i64: 1, 128>}, {transform_indices = @transform_3, window_bounds = array<i64: 128, 512>}, {transform_indices = @transform_4, window_bounds = array<i64: 256, 512>}, {transform_indices = @transform_5, window_bounds = array<i64: 1, 512>}, {transform_indices = @transform_6, window_bounds = array<i64: 8, 128>}, {transform_indices = @transform_7, window_bounds = array<i64: 8, 128>}]} {
    %c0 = arith.constant 0 : index
    %c0_0 = arith.constant 0 : index
    %0 = vector.load %arg1[%c0, %c0_0] : memref<8x128xf32, #tpu.memory_space<vmem>>, vector<8x128xf32>
    %1 = arith.truncf %0 : vector<8x128xf32> to vector<8x128xbf16>
    %c0_1 = arith.constant 0 : index
    %c0_2 = arith.constant 0 : index
    %2 = vector.load %arg2[%c0_1, %c0_2] : memref<1x256xf32, #tpu.memory_space<vmem>>, vector<1x256xf32>
    %3 = arith.truncf %2 : vector<1x256xf32> to vector<1x256xbf16>
    %c0_3 = arith.constant 0 : index
    %c0_4 = arith.constant 0 : index
    %4 = vector.load %arg4[%c0_3, %c0_4] : memref<128x512xbf16, #tpu.memory_space<vmem>>, vector<128x512xbf16>
    %cst = arith.constant dense<0.000000e+00> : vector<8x512xf32>
    %5 = tpu.matmul %1, %4, %cst {dimension_numbers = #tpu.dot_dimension_numbers<[1], [0], [0], [1], [0, 0, 1, 1], [], []>} : vector<8x128xbf16>, vector<128x512xbf16>, vector<8x512xf32> -> vector<8x512xf32>
    %c0_5 = arith.constant 0 : index
    %c0_6 = arith.constant 0 : index
    %6 = vector.load %arg5[%c0_5, %c0_6] : memref<256x512xbf16, #tpu.memory_space<vmem>>, vector<256x512xbf16>
    %cst_7 = arith.constant dense<0.000000e+00> : vector<1x512xf32>
    %7 = tpu.matmul %3, %6, %cst_7 {dimension_numbers = #tpu.dot_dimension_numbers<[1], [0], [0], [1], [0, 0, 1, 1], [], []>} : vector<1x256xbf16>, vector<256x512xbf16>, vector<1x512xf32> -> vector<1x512xf32>
    %8 = vector.broadcast %7 : vector<1x512xf32> to vector<8x512xf32>
    %9 = arith.addf %5, %8 : vector<8x512xf32>
    %c0_8 = arith.constant 0 : index
    %c0_9 = arith.constant 0 : index
    %10 = vector.load %arg6[%c0_8, %c0_9] : memref<1x512xf32, #tpu.memory_space<vmem>>, vector<1x512xf32>
    %11 = vector.broadcast %10 : vector<1x512xf32> to vector<8x512xf32>
    %12 = arith.addf %9, %11 : vector<8x512xf32>
    %13 = vector.extract_strided_slice %12 {offsets = [0, 0], sizes = [8, 128], strides = [1, 1]} : vector<8x512xf32> to vector<8x128xf32>
    %14 = arith.negf %13 : vector<8x128xf32>
    %15 = math.exp %14 : vector<8x128xf32>
    %cst_10 = arith.constant 1.000000e+00 : f32
    %16 = vector.broadcast %cst_10 : f32 to vector<8x128xf32>
    %17 = arith.addf %16, %15 : vector<8x128xf32>
    %18 = arith.divf %16, %17 : vector<8x128xf32>
    %19 = vector.extract_strided_slice %12 {offsets = [0, 128], sizes = [8, 128], strides = [1, 1]} : vector<8x512xf32> to vector<8x128xf32>
    %20 = arith.negf %19 : vector<8x128xf32>
    %21 = math.exp %20 : vector<8x128xf32>
    %cst_11 = arith.constant 1.000000e+00 : f32
    %22 = vector.broadcast %cst_11 : f32 to vector<8x128xf32>
    %23 = arith.addf %22, %21 : vector<8x128xf32>
    %24 = arith.divf %22, %23 : vector<8x128xf32>
    %25 = vector.extract_strided_slice %12 {offsets = [0, 256], sizes = [8, 128], strides = [1, 1]} : vector<8x512xf32> to vector<8x128xf32>
    %26 = arith.negf %25 : vector<8x128xf32>
    %27 = math.exp %26 : vector<8x128xf32>
    %cst_12 = arith.constant 1.000000e+00 : f32
    %28 = vector.broadcast %cst_12 : f32 to vector<8x128xf32>
    %29 = arith.addf %28, %27 : vector<8x128xf32>
    %30 = arith.divf %28, %29 : vector<8x128xf32>
    %31 = vector.extract_strided_slice %12 {offsets = [0, 384], sizes = [8, 128], strides = [1, 1]} : vector<8x512xf32> to vector<8x128xf32>
    %32 = math.tanh %31 : vector<8x128xf32>
    %c0_13 = arith.constant 0 : index
    %c0_14 = arith.constant 0 : index
    %33 = vector.load %arg3[%c0_13, %c0_14] : memref<1x128xf32, #tpu.memory_space<vmem>>, vector<1x128xf32>
    %34 = vector.broadcast %33 : vector<1x128xf32> to vector<8x128xf32>
    %35 = arith.mulf %18, %34 : vector<8x128xf32>
    %36 = arith.mulf %24, %32 : vector<8x128xf32>
    %37 = arith.addf %35, %36 : vector<8x128xf32>
    %c0_15 = arith.constant 0 : index
    %c0_16 = arith.constant 0 : index
    %38 = vector.load %arg8[%c0_15, %c0_16] : memref<8x128xf32, #tpu.memory_space<vmem>>, vector<8x128xf32>
    tpu.vector_store %arg8[%c0_15, %c0_16], %37 {strides = array<i32>} : memref<8x128xf32, #tpu.memory_space<vmem>>, vector<8x128xf32>,
    %39 = math.tanh %37 : vector<8x128xf32>
    %40 = arith.mulf %30, %39 : vector<8x128xf32>
    %c0_17 = arith.constant 0 : index
    %c0_18 = arith.constant 0 : index
    %41 = vector.load %arg7[%c0_17, %c0_18] : memref<8x128xf32, #tpu.memory_space<vmem>>, vector<8x128xf32>
    tpu.vector_store %arg7[%c0_17, %c0_18], %40 {strides = array<i32>} : memref<8x128xf32, #tpu.memory_space<vmem>>, vector<8x128xf32>,
    return
  }
  func.func @transform_0(%arg0: i32) -> (i32, i32) {
    %c0_i32 = arith.constant 0 : i32
    %c0_i32_0 = arith.constant 0 : i32
    %c0_i32_1 = arith.constant 0 : i32
    return %c0_i32, %c0_i32_0 : i32, i32
  }
  func.func @transform_1(%arg0: i32) -> (i32, i32) {
    %c0_i32 = arith.constant 0 : i32
    %c0_i32_0 = arith.constant 0 : i32
    %c0_i32_1 = arith.constant 0 : i32
    return %c0_i32, %c0_i32_0 : i32, i32
  }
  func.func @transform_2(%arg0: i32) -> (i32, i32) {
    %c0_i32 = arith.constant 0 : i32
    %c0_i32_0 = arith.constant 0 : i32
    return %c0_i32, %arg0 : i32, i32
  }
  func.func @transform_3(%arg0: i32) -> (i32, i32) {
    %c0_i32 = arith.constant 0 : i32
    %c0_i32_0 = arith.constant 0 : i32
    return %c0_i32, %arg0 : i32, i32
  }
  func.func @transform_4(%arg0: i32) -> (i32, i32) {
    %c0_i32 = arith.constant 0 : i32
    %c0_i32_0 = arith.constant 0 : i32
    return %c0_i32, %arg0 : i32, i32
  }
  func.func @transform_5(%arg0: i32) -> (i32, i32) {
    %c0_i32 = arith.constant 0 : i32
    %c0_i32_0 = arith.constant 0 : i32
    return %c0_i32, %arg0 : i32, i32
  }
  func.func @transform_6(%arg0: i32) -> (i32, i32) {
    %c0_i32 = arith.constant 0 : i32
    %c0_i32_0 = arith.constant 0 : i32
    return %c0_i32, %arg0 : i32, i32
  }
  func.func @transform_7(%arg0: i32) -> (i32, i32) {
    %c0_i32 = arith.constant 0 : i32
    %c0_i32_0 = arith.constant 0 : i32
    return %c0_i32, %arg0 : i32, i32
  }
}

</mosaic_0001>

<bundles_post_ra>
// kernel: tpu_custom_call.1
= control target key start
LH: loop header
LB: loop body
LE: loop exit
PB: predicated region body
PF: predicated region fallthrough
CT: control target
= control target key end

     0   :  { %s2555_s0 = inlined_call_operand.hbm [shape: f32[8,128], index: 0, kind: input, shape index: {}]   ;;  %s2556_s1 = inlined_call_operand.hbm [shape: f32[1,256], index: 1, kind: input, shape index: {}]   ;;  %s2557_s2 = inlined_call_operand.hbm [shape: f32[1,256], index: 2, kind: input, shape index: {}]   ;;  %s2558_s3 = inlined_call_operand.hbm [shape: bf16[128,1024], index: 3, kind: input, shape index: {}]   ;;  %s2559_s4 = inlined_call_operand.hbm [shape: bf16[256,1024], index: 4, kind: input, shape index: {}]   ;;  %s2560_s5 = inlined_call_operand.vmem [shape: f32[1,1024], index: 5, kind: input, shape index: {}]   ;;  %s2561_s6 = inlined_call_operand.hbm [shape: f32[8,256], index: 6, kind: output, shape index: {0}]   ;;  %s2562_s7 = inlined_call_operand.hbm [shape: f32[8,256], index: 7, kind: output, shape index: {1}]  }
   0x1   :  { %2575 = sst [smem:[#allocation21_spill]] %s2555_s0 }
   0x2   :  { %2576 = sst [smem:[#allocation22_spill]] %s2557_s2 }
   0x3   :  { %13 = vsyncpa [#allocation3], 0 }
   0x4   :  { %14 = vsyncpa [#allocation6], 0 }
   0x5   :  { %15 = vsyncpa [#allocation4], 0 }
   0x6   :  { %17 = vsyncpa [#allocation4 + $0x1], 0 }
   0x7   :  { %18 = vsyncpa [#allocation12], 0 }
   0x8   :  { %20 = vsyncpa [#allocation12 + $0x1], 0  ;;  %s2116_s24 = smov 0   ;;  %s2118_s25 = smov 0  }
   0x9   :  { %s2120_s26 = smov 0   ;;  %s2122_s27 = smov 0  }
   0xa LB: > { %2577 = sst [smem:[#allocation18_spill]] %s2059_s26  ;;  %s2137_s28 = sadd.s32 4294967295, %s2063_s27   ;;  %s2063_s27 = sphi %s2122_s27, %s2605_s27   ;;  %s2059_s26 = sphi %s2120_s26, %s2607_s26   ;;  %s2055_s25 = sphi %s2118_s25, %s2609_s25   ;;  %s2051_s24 = sphi %s2116_s24, %s2608_s24  }
   0xb   : > { %s1451_s29 = sadd.s32 4294967294, %s2063_s27   ;;  %s2141_s30 = sadd.s32 1, %s2063_s27  }
   0xc   : > { %2578 = sst [smem:[#allocation19_spill]] %s2141_s30  ;;  %s75_s8 = sadd.s32 1, %s2059_s26 }
   0xd   : > { %s72_s9 = ssub.s32 %s2063_s27, %s2141_s30  ;;  %p2563_p0 = scmp.ne.s32.totalorder %s2059_s26, %s2055_s25 }
   0xe   : > { %p73_p1 = scmp.eq.s32.totalorder %s72_s9, 0  ;;  %p88_p2 = scmp.ne.s32.totalorder %s2055_s25, %s2051_s24 }
   0xf   : > { %p2564_p3 = scmp.eq.s32.totalorder %s2137_s28, 0  ;;  %p190_p4 = scmp.eq.s32.totalorder %s2137_s28, 1 }
  0x10   : > { %s2153_s10 = scalar_select %p73_p1, %s2059_s26, %s75_s8  }
  0x11   : > { %p2157_p5 = por %p2564_p3, %p88_p2  ;;  %p2164_p6 = por %p190_p4, %p2563_p0 }
  0x12   : > { %2579 = sst [smem:[#allocation20_spill]] %s2153_s10  ;;  %p196_p7 = scmp.eq.s32.totalorder %s1451_s29, 1 }
  0x13   : > { %s2580_s11 = scalar_select %p2157_p5, 1, 0 }
  0x14   : > { %s2581_s12 = scalar_select %p2164_p6, 1, 0 }
  0x15   : > { %p1452_p8 = scmp.ge.s32.totalorder %s2063_s27, 1  ;;  %p229_p9 = scmp.lt.s32.totalorder %s2063_s27, 3 }
  0x16   : > { %p2170_p10 = por %p196_p7, %p88_p2  ;;  %s2065_s15 = smov [#allocation2]  }
  0x17   : > { %p2174_p11 = pnand %p1452_p8, %p229_p9  ;;  %s242_s16 = sshll.u32 %s2065_s15, 4  ;;  %s243_s16 = int_to_ptr.vmem [resolvable:$true] %s242_s16 }
  0x18   : > { %s2582_s13 = scalar_select %p2170_p10, 1, 0 }
  0x19   : > { %s2583_s14 = scalar_select %p2174_p11, 1, 0 }
  0x1a   : > { %p1597_p13 = pneg %p2174_p11  ;;  %p83_p1 = scmp.eq.s32.totalorder %s2063_s27, 0 }
  0x1b   : > { %s264_s17 = sand.u32 1, %s2063_s27   ;;  %p2585_p2 = scmp.ne.s32.totalorder %s2059_s26, %s2055_s25 }
  0x1c   : > { %p2186_p0 = pnand %p1597_p13, %p2564_p3  ;;  %s2198_s20 = sand.u32 1, %s2059_s26  }
  0x1d   : > { %p2193_p7 = por %p83_p1, %p2585_p2  ;;  %s1836_s21 = scalar_lea.vmem %s243_s16, 128 }
  0x1e   : > { %s2584_s18 = scalar_select %p2186_p0, 1, 0 }
  0x1f   : > { %p2569_p8 = pneg %p2186_p0  ;;  %p1837_p9 = scmp.ne.s32.totalorder %s243_s16, %s1836_s21 }
  0x20   : > { %p1844_p3 = scmp.lt.s32.totalorder %s243_s16, %s243_s16  ;;  %p1845_p4 = scmp.lt.s32.totalorder %s1836_s21, %s1836_s21 }
  0x21   : > { %p1839_p12 = pnand %p1837_p9, %p2569_p8 }
  0x22   : > { %p1846_p10 = por %p1845_p4, %p1844_p3 }
  0x23   : > { %p1840_p13 = pneg %p1839_p12 }
  0x25   : > { %p1847_p6 = pnand %p1846_p10, %p1840_p13 }
  0x27   : > { %1850 = shalt.err (!%p1847_p6)
}
  0x28   : > { %s2587_s0 = sld [smem:[#allocation21_spill]]  ;;  %s1456_s29 = sshll.u32 %s2063_s27, 4 }
  0x29   : > { %s267_s8 = scalar_lea.vmem [#allocation7], %s2198_s20  ;;  %s2588_s2 = sld [smem:[#allocation22_spill]] }
  0x2a   : > { %s274_s9 = sshll.u32 %s267_s8, 4  ;;  %p2589_p3 = scmp.lt.s32.totalorder %s2063_s27, 2  ;;  %s2217_s9 = int_to_ptr.vmem [resolvable:$true] %s274_s9 }
  0x2c   : > { %p2223_p6 = pnand %p2589_p3, %p2193_p7 }
  0x2e   : > { %1600 = dma.hbm_to_vmem [thread:$0]  (!%p2186_p0), %s2587_s0, 128, %s243_s16, [#allocation3]  }
  0x2f   : > { %s2215_s10 = scalar_lea.hbm %s2588_s2, %s1456_s29  ;;  %s1457_s16 = sshll.u32 %s2198_s20, 8 }
  0x30   : > { %s2229_s8 = scalar_lea.vmem [#allocation8], %s1457_s16  ;;  %s2232_s29 = scalar_lea.sflag [#allocation3], %s264_s17 }
  0x31   : > { %s292_s15 = sshll.u32 %s2229_s8, 4  ;;  %s1851_s21 = scalar_lea.hbm %s2215_s10, 16  ;;  %s2261_s15 = int_to_ptr.vmem [resolvable:$true] %s292_s15 }
  0x32   : > { %p1852_p10 = scmp.ne.s32.totalorder %s2215_s10, %s1851_s21  ;;  %p2238_p12 = pneg %p2223_p6 }
  0x33   : > { %s1856_s16 = scalar_lea.hbm %s2588_s2, 32  ;;  %p1857_p2 = scmp.lt.s32.totalorder %s2215_s10, %s2588_s2 }
  0x34   : > { %p1854_p1 = pnand %p2238_p12, %p1852_p10  ;;  %p1858_p7 = scmp.lt.s32.totalorder %s1856_s16, %s1851_s21 }
  0x36   : > { %p1855_p4 = pneg %p1854_p1  ;;  %p1859_p9 = por %p1858_p7, %p1857_p2 }
  0x38   : > { %p1860_p13 = pnand %p1859_p9, %p1855_p4 }
  0x3a   : > { %1863 = shalt.err (!%p1860_p13)
}
  0x3b   : > { %s1864_s17 = scalar_lea.vmem %s2217_s9, 16  ;;  %s2066_s8 = smov [#allocation7]  }
  0x3c   : > { %p1865_p3 = scmp.ne.s32.totalorder %s2217_s9, %s1864_s17  ;;  %s1869_s26 = sshll.u32 %s2066_s8, 4  ;;  %s1870_s26 = int_to_ptr.vmem [resolvable:$false] %s1869_s26 }
  0x3d   : > { %s1871_s19 = scalar_lea.vmem %s1870_s26, 32  ;;  %p1872_p8 = scmp.lt.s32.totalorder %s2217_s9, %s1870_s26 }
  0x3e   : > { %p1867_p10 = pnand %p1865_p3, %p2238_p12  ;;  %p1873_p5 = scmp.lt.s32.totalorder %s1871_s19, %s1864_s17 }
  0x40   : > { %p1868_p1 = pneg %p1867_p10  ;;  %p1874_p11 = por %p1873_p5, %p1872_p8 }
  0x42   : > { %p1875_p0 = pnand %p1874_p11, %p1868_p1 }
  0x44   : > { %1878 = shalt.err (!%p1875_p0)
}
  0x45   : > { %1607 = dma.hbm_to_vmem [thread:$0]  (!%p2223_p6), %s2215_s10, 16, %s2217_s9, %s2232_s29  }
  0x46   : > { %s2592_s30 = sshll.u32 %s2198_s20, 9  ;;  %s1577_s16 = sshll.u32 %s2063_s27, 8 }
  0x47   : > { %s306_s23 = scalar_lea.vmem [#allocation9], %s2592_s30  ;;  %s2273_s26 = scalar_lea.hbm %s2558_s3, %s1577_s16 }
  0x48   : > { %s313_s21 = sshll.u32 %s306_s23, 4  ;;  %s1879_s19 = scalar_lea.hbm %s2273_s26, 4096  ;;  %s2266_s21 = int_to_ptr.vmem [resolvable:$true] %s313_s21 }
  0x49   : > { %p1880_p0 = scmp.ne.s32.totalorder %s2273_s26, %s1879_s19  ;;  %s1884_s9 = scalar_lea.hbm %s2558_s3, 8192 }
  0x4a   : > { %p1885_p8 = scmp.lt.s32.totalorder %s2273_s26, %s2558_s3  ;;  %p1886_p4 = scmp.lt.s32.totalorder %s1884_s9, %s1879_s19 }
  0x4b   : > { %p1882_p5 = pnand %p1880_p0, %p2238_p12 }
  0x4c   : > { %p1887_p2 = por %p1886_p4, %p1885_p8 }
  0x4d   : > { %p1883_p11 = pneg %p1882_p5 }
  0x4f   : > { %p1888_p7 = pnand %p1887_p2, %p1883_p11 }
  0x51   : > { %1891 = shalt.err (!%p1888_p7)
}
  0x52   : > { %s1892_s17 = scalar_lea.vmem %s2261_s15, 4096  ;;  %s2067_s8 = smov [#allocation8]  }
  0x53   : > { %p1893_p9 = scmp.ne.s32.totalorder %s2261_s15, %s1892_s17  ;;  %s1897_s10 = sshll.u32 %s2067_s8, 4  ;;  %s1898_s10 = int_to_ptr.vmem [resolvable:$false] %s1897_s10 }
  0x54   : > { %s1899_s20 = scalar_lea.vmem %s1898_s10, 8192  ;;  %p1900_p10 = scmp.lt.s32.totalorder %s2261_s15, %s1898_s10 }
  0x55   : > { %p1895_p13 = pnand %p1893_p9, %p2238_p12  ;;  %p1901_p1 = scmp.lt.s32.totalorder %s1899_s20, %s1892_s17 }
  0x57   : > { %p1896_p3 = pneg %p1895_p13  ;;  %p1902_p0 = por %p1901_p1, %p1900_p10 }
  0x59   : > { %p1903_p5 = pnand %p1902_p0, %p1896_p3 }
  0x5b   : > { %1906 = shalt.err (!%p1903_p5)
}
  0x5c   : > { %s2574_s19 = smov 512   ;;  %s2069_s9 = smov 256  }
  0x5d   : > { %s2070_s30 = smov 16   ;;  %s2071_s23 = smov [#allocation5]  }
  0x5e   : > { %1610 = dma.hbm_to_vmem [thread:$0]  (!%p2223_p6), %s2273_s26, 4096, %s2261_s15, %s2232_s29, %s2574_s19, %s2069_s9, %s2070_s30  }
  0x5f   : > { %s253_s8 = sshll.u32 %s2071_s23, 4  ;;  %s2304_s20 = scalar_lea.hbm %s2559_s4, %s1577_s16  ;;  %s254_s8 = int_to_ptr.vmem [resolvable:$true] %s253_s8 }
  0x60   : > { %s1918_s2 = scalar_lea.vmem %s254_s8, 32  ;;  %p2593_p8 = scmp.ne.s32.totalorder %s2584_s18, 0 }
  0x61   : > { %p1919_p11 = scmp.ne.s32.totalorder %s254_s8, %s1918_s2  ;;  %p1926_p9 = scmp.lt.s32.totalorder %s254_s8, %s254_s8 }
  0x62   : > { %p2594_p4 = pneg %p2593_p8  ;;  %p1927_p13 = scmp.lt.s32.totalorder %s1918_s2, %s1918_s2 }
  0x64   : > { %p1921_p2 = pnand %p1919_p11, %p2594_p4  ;;  %p1928_p3 = por %p1927_p13, %p1926_p9 }
  0x66   : > { %p1922_p7 = pneg %p1921_p2 }
  0x68   : > { %p1929_p10 = pnand %p1928_p3, %p1922_p7 }
  0x6a   : > { %1932 = shalt.err (!%p1929_p10)
}
  0x6b   : > { %1603 = dma.hbm_to_vmem [thread:$0]  (!%p2593_p8), %s2556_s1, 32, %s254_s8, [#allocation6]  }
  0x6c   : > { %s1933_s16 = scalar_lea.hbm %s2304_s20, 8192  ;;  %s1938_s17 = scalar_lea.hbm %s2559_s4, 16384 }
  0x6d   : > { %p1934_p1 = scmp.ne.s32.totalorder %s2304_s20, %s1933_s16  ;;  %p1939_p11 = scmp.lt.s32.totalorder %s2304_s20, %s2559_s4 }
  0x6e   : > { %p1940_p4 = scmp.lt.s32.totalorder %s1938_s17, %s1933_s16 }
  0x6f   : > { %p1936_p0 = pnand %p1934_p1, %p2238_p12 }
  0x70   : > { %p1941_p2 = por %p1940_p4, %p1939_p11 }
  0x71   : > { %p1937_p5 = pneg %p1936_p0 }
  0x73   : > { %p1942_p7 = pnand %p1941_p2, %p1937_p5 }
  0x75   : > { %1945 = shalt.err (!%p1942_p7)
}
  0x76   : > { %s1946_s18 = scalar_lea.vmem %s2266_s21, 8192  ;;  %s2072_s8 = smov [#allocation9]  }
  0x77   : > { %p1947_p8 = scmp.ne.s32.totalorder %s2266_s21, %s1946_s18  ;;  %s1951_s15 = sshll.u32 %s2072_s8, 4  ;;  %s1952_s15 = int_to_ptr.vmem [resolvable:$false] %s1951_s15 }
  0x78   : > { %s1953_s26 = scalar_lea.vmem %s1952_s15, 16384  ;;  %p1954_p3 = scmp.lt.s32.totalorder %s2266_s21, %s1952_s15 }
  0x79   : > { %p1949_p9 = pnand %p1947_p8, %p2238_p12  ;;  %p1955_p10 = scmp.lt.s32.totalorder %s1953_s26, %s1946_s18 }
  0x7b   : > { %p1950_p13 = pneg %p1949_p9  ;;  %p1956_p1 = por %p1955_p10, %p1954_p3 }
  0x7d   : > { %p1957_p0 = pnand %p1956_p1, %p1950_p13 }
  0x7f   : > { %1960 = shalt.err (!%p1957_p0)
}
  0x80   : > { %s2595_s19 = smov 512   ;;  %p2596_p12 = scmp.ne.s32.totalorder %s2583_s14, 0 }
  0x81   : > { %1613 = dma.hbm_to_vmem [thread:$0]  (!%p2223_p6), %s2304_s20, 8192, %s2266_s21, %s2232_s29, %s2595_s19, %s2069_s9, %s2070_s30  }
  0x82   : > { %333 = sbr.rel (%p2596_p12) target bundleno = 514 (0x202), region = 44  ;;  %p2597_p5 = scmp.eq.s32.totalorder (!%p2596_p12), %s2137_s28, 0 }
  0x87   : > { %2030 = dma.done.wait (%p2597_p5), [#allocation3], 128   ;;  %p2598_p11 = pmov %p2597_p5 }
  0x88   : > { %p2599_p4 = pmov %p2597_p5 }
  0x89   : > { %2032 = vsyncadd (%p2598_p11), [#allocation3], 4294967168 }
  0x8a   : > { %2034 = dma.done.wait (%p2599_p4), [#allocation6], 32   ;;  %p2600_p2 = pmov %p2599_p4 }
  0x8b   : > { %s343_s0 = sand.u32 1, %s2137_s28   ;;  %s2350_s22 = sand.u32 1, %s2055_s25  }
  0x8c   : > { %2036 = vsyncadd (%p2600_p2), [#allocation6], 4294967264  ;;  %s344_s14 = scalar_lea.sflag [#allocation3], %s343_s0  ;;  %s346_s29 = scalar_lea.vmem [#allocation7], %s2350_s22 }
  0x8d   : > { %p2601_p6 = scmp.ne.s32.totalorder %s2580_s11, 0 }
  0x8f   : > { %2038 = dma.done.wait (%p2601_p6), %s344_s14, 12304  }
  0x90   : > { %2040 = vsyncadd (%p2601_p6), %s344_s14, 4294954992  ;;  %s1467_s21 = sshll.u32 %s2350_s22, 9  ;;  %v425_v36 = vlaneseq  ;;  %s1466_s11 = sshll.u32 %s2350_s22, 8  ;;  %v423_v49 = vld [vmem:[#allocation5] sm:$0x3] }
  0x91   : > { %s2358_s9 = scalar_lea.vmem [#allocation9], %s1467_s21  ;;  %s2413_s30 = scalar_lea.vmem [#allocation8], %s1466_s11 }
  0x92   : > { %v1665_v0 = vld [vmem:[%s2358_s9 + $0xe4] ss:$16 sps:$4 sm:$0xff]   ;;  %v1667_v1 = vld [vmem:[%s2358_s9 + $0xec] ss:$16 sps:$4 sm:$0xff]   ;;  %v1669_v2 = vld [vmem:[%s2358_s9 + $0xe0] ss:$16 sps:$4 sm:$0xff]  }
  0x93   : > { %853 = vmatprep.subr.bf16.mxu0 %v1665_v0  ;;  %v1670_v3 = vld [vmem:[%s2358_s9 + $0xe8] ss:$16 sps:$4 sm:$0xff]   ;;  %894 = vmatprep.subr.bf16.mxu1 %v1667_v1  ;;  %v1671_v4 = vld [vmem:[%s2358_s9 + $0xc4] ss:$16 sps:$4 sm:$0xff]   ;;  %v1673_v5 = vld [vmem:[%s2358_s9 + $0xcc] ss:$16 sps:$4 sm:$0xff]  }
  0x94   : > { %854 = vmatpush1.bf16.msra.mxu0 %v1669_v2  ;;  %895 = vmatpush1.bf16.msra.mxu1 %v1670_v3  ;;  %v1675_v6 = vld [vmem:[%s2358_s9 + $0xc0] ss:$16 sps:$4 sm:$0xff]   ;;  %v1676_v7 = vld [vmem:[%s2358_s9 + $0xc8] ss:$16 sps:$4 sm:$0xff]   ;;  %v1677_v8 = vld [vmem:[%s2358_s9 + $0xa4] ss:$16 sps:$4 sm:$0xff]  }
  0x95   : > { %855 = vmatprep.subr.bf16.mxu0 %v1671_v4  ;;  %896 = vmatprep.subr.bf16.mxu1 %v1673_v5  ;;  %v1679_v9 = vld [vmem:[%s2358_s9 + $0xac] ss:$16 sps:$4 sm:$0xff]   ;;  %v1681_v10 = vld [vmem:[%s2358_s9 + $0xa0] ss:$16 sps:$4 sm:$0xff]   ;;  %v1682_v11 = vld [vmem:[%s2358_s9 + $0xa8] ss:$16 sps:$4 sm:$0xff]  }
  0x96   : > { %v1683_v12 = vld [vmem:[%s2358_s9 + $0x84] ss:$16 sps:$4 sm:$0xff]   ;;  %v1685_v13 = vld [vmem:[%s2358_s9 + $0x8c] ss:$16 sps:$4 sm:$0xff]   ;;  %v1687_v14 = vld [vmem:[%s2358_s9 + $0x80] ss:$16 sps:$4 sm:$0xff]  }
  0x97   : > { %v1688_v15 = vld [vmem:[%s2358_s9 + $0x88] ss:$16 sps:$4 sm:$0xff]   ;;  %v1689_v16 = vld [vmem:[%s2358_s9 + $0x64] ss:$16 sps:$4 sm:$0xff]   ;;  %v1691_v17 = vld [vmem:[%s2358_s9 + $0x6c] ss:$16 sps:$4 sm:$0xff]  }
  0x98   : > { %856 = vmatpush1.bf16.msra.mxu0 %v1675_v6  ;;  %897 = vmatpush1.bf16.msra.mxu1 %v1676_v7  ;;  %v1693_v18 = vld [vmem:[%s2358_s9 + $0x60] ss:$16 sps:$4 sm:$0xff]   ;;  %v1694_v19 = vld [vmem:[%s2358_s9 + $0x68] ss:$16 sps:$4 sm:$0xff]   ;;  %v1695_v20 = vld [vmem:[%s2358_s9 + $0x44] ss:$16 sps:$4 sm:$0xff]  }
  0x99   : > { %857 = vmatprep.subr.bf16.mxu0 %v1677_v8  ;;  %898 = vmatprep.subr.bf16.mxu1 %v1679_v9  ;;  %v1697_v21 = vld [vmem:[%s2358_s9 + $0x4c] ss:$16 sps:$4 sm:$0xff]   ;;  %v1699_v22 = vld [vmem:[%s2358_s9 + $0x40] ss:$16 sps:$4 sm:$0xff]   ;;  %v1700_v23 = vld [vmem:[%s2358_s9 + $0x48] ss:$16 sps:$4 sm:$0xff]  }
  0x9a   : > { %v1701_v24 = vld [vmem:[%s2358_s9 + $0x24] ss:$16 sps:$4 sm:$0xff]   ;;  %v1703_v25 = vld [vmem:[%s2358_s9 + $0x2c] ss:$16 sps:$4 sm:$0xff]   ;;  %v1705_v26 = vld [vmem:[%s2358_s9 + $0x20] ss:$16 sps:$4 sm:$0xff]  }
  0x9b   : > { %v1706_v27 = vld [vmem:[%s2358_s9 + $0x28] ss:$16 sps:$4 sm:$0xff]   ;;  %v1707_v28 = vld [vmem:[%s2358_s9 + $0x4] ss:$16 sps:$4 sm:$0xff]   ;;  %v1709_v29 = vld [vmem:[%s2358_s9 + $0xc] ss:$16 sps:$4 sm:$0xff]  }
  0x9c   : > { %858 = vmatpush1.bf16.msra.mxu0 %v1681_v10  ;;  %899 = vmatpush1.bf16.msra.mxu1 %v1682_v11  ;;  %v1711_v30 = vld [vmem:[%s2358_s9] ss:$16 sps:$4 sm:$0xff]   ;;  %v1712_v31 = vld [vmem:[%s2358_s9 + $0x8] ss:$16 sps:$4 sm:$0xff]   ;;  %v1713_v32 = vld [vmem:[%s2358_s9 + $0x1e4] ss:$16 sps:$4 sm:$0xff]  }
  0x9d   : > { %859 = vmatprep.subr.bf16.mxu0 %v1683_v12  ;;  %900 = vmatprep.subr.bf16.mxu1 %v1685_v13  ;;  %v1715_v33 = vld [vmem:[%s2358_s9 + $0x1ec] ss:$16 sps:$4 sm:$0xff]   ;;  %v1717_v34 = vld [vmem:[%s2358_s9 + $0x1e0] ss:$16 sps:$4 sm:$0xff]   ;;  %v1718_v35 = vld [vmem:[%s2358_s9 + $0x1e8] ss:$16 sps:$4 sm:$0xff]  }
  0x9e   : > { %v1719_v37 = vld [vmem:[%s2358_s9 + $0x1c4] ss:$16 sps:$4 sm:$0xff]   ;;  %v1721_v38 = vld [vmem:[%s2358_s9 + $0x1cc] ss:$16 sps:$4 sm:$0xff]   ;;  %v1723_v39 = vld [vmem:[%s2358_s9 + $0x1c0] ss:$16 sps:$4 sm:$0xff]  }
  0x9f   : > { %v2399_v40 = vshrl.u32 %v425_v36, 7  ;;  %v1724_v41 = vld [vmem:[%s2358_s9 + $0x1c8] ss:$16 sps:$4 sm:$0xff]   ;;  %v1725_v42 = vld [vmem:[%s2358_s9 + $0x1a4] ss:$16 sps:$4 sm:$0xff]   ;;  %s1470_s20 = sshll.u32 %s2137_s28, 2 }
  0xa0   : > { %860 = vmatpush1.bf16.msra.mxu0 %v1687_v14  ;;  %901 = vmatpush1.bf16.msra.mxu1 %v1688_v15  ;;  %v1727_v43 = vld [vmem:[%s2358_s9 + $0x1ac] ss:$16 sps:$4 sm:$0xff]   ;;  %v1729_v44 = vld [vmem:[%s2358_s9 + $0x1a0] ss:$16 sps:$4 sm:$0xff]   ;;  %v1730_v45 = vld [vmem:[%s2358_s9 + $0x1a8] ss:$16 sps:$4 sm:$0xff]  }
  0xa1   : > { %861 = vmatprep.subr.bf16.mxu0 %v1689_v16  ;;  %902 = vmatprep.subr.bf16.mxu1 %v1691_v17  ;;  %v431_v46 = vsub.s32 1, %v2399_v40  ;;  %v1731_v47 = vld [vmem:[%s2358_s9 + $0x184] ss:$16 sps:$4 sm:$0xff]   ;;  %v1733_v48 = vld [vmem:[%s2358_s9 + $0x18c] ss:$16 sps:$4 sm:$0xff]   ;;  %v2428_v1 = vsub.s32 0, %v2399_v40 }
  0xa2   : > { %v1735_v50 = vld [vmem:[%s2358_s9 + $0x180] ss:$16 sps:$4 sm:$0xff]   ;;  %v1736_v52 = vld [vmem:[%s2358_s9 + $0x188] ss:$16 sps:$4 sm:$0xff]   ;;  %v1737_v53 = vld [vmem:[%s2358_s9 + $0x164] ss:$16 sps:$4 sm:$0xff]  }
  0xa3   : > { %v432_v51 = vrot.slane %v423_v49, %v431_v46  ;;  %v1739_v54 = vld [vmem:[%s2358_s9 + $0x16c] ss:$16 sps:$4 sm:$0xff]   ;;  %v1741_v56 = vld [vmem:[%s2358_s9 + $0x160] ss:$16 sps:$4 sm:$0xff]   ;;  %v1742_v57 = vld [vmem:[%s2358_s9 + $0x168] ss:$16 sps:$4 sm:$0xff]   ;;  %v428_v6 = vrot.slane %v423_v49, %v2428_v1 }
  0xa4   : > { %862 = vmatpush1.bf16.msra.mxu0 %v1693_v18  ;;  %903 = vmatpush1.bf16.msra.mxu1 %v1694_v19  ;;  %v1743_v58 = vld [vmem:[%s2358_s9 + $0x144] ss:$16 sps:$4 sm:$0xff]   ;;  %v1745_v59 = vld [vmem:[%s2358_s9 + $0x14c] ss:$16 sps:$4 sm:$0xff]   ;;  %v1747_v60 = vld [vmem:[%s2358_s9 + $0x140] ss:$16 sps:$4 sm:$0xff]  }
  0xa5   : > { %863 = vmatprep.subr.bf16.mxu0 %v1695_v20  ;;  %904 = vmatprep.subr.bf16.mxu1 %v1697_v21  ;;  %v436_v55 = vpack.c.bf16 %v432_v51, %v432_v51  ;;  %v1748_v61 = vld [vmem:[%s2358_s9 + $0x148] ss:$16 sps:$4 sm:$0xff]   ;;  %v1749_v62 = vld [vmem:[%s2358_s9 + $0x124] ss:$16 sps:$4 sm:$0xff]   ;;  %v1751_v63 = vld [vmem:[%s2358_s9 + $0x12c] ss:$16 sps:$4 sm:$0xff]   ;;  %v435_v10 = vpack.c.bf16 %v428_v6, %v428_v6 }
  0xa6   : > { %v1753_v0 = vld [vmem:[%s2358_s9 + $0x120] ss:$16 sps:$4 sm:$0xff]   ;;  %v1754_v2 = vld [vmem:[%s2358_s9 + $0x128] ss:$16 sps:$4 sm:$0xff]   ;;  %v1755_v3 = vld [vmem:[%s2358_s9 + $0x104] ss:$16 sps:$4 sm:$0xff]  }
  0xa7   : > { %885 = vmatprep.mubr.bf16.mxu0 %v436_v55  ;;  %926 = vmatprep.mubr.bf16.mxu1 %v436_v55  ;;  %v1757_v4 = vld [vmem:[%s2358_s9 + $0x10c] ss:$16 sps:$4 sm:$0xff]   ;;  %v1759_v5 = vld [vmem:[%s2358_s9 + $0x100] ss:$16 sps:$4 sm:$0xff]   ;;  %v1760_v7 = vld [vmem:[%s2358_s9 + $0x108] ss:$16 sps:$4 sm:$0xff]  }
  0xa8   : > { %864 = vmatpush1.bf16.msra.mxu0 %v1699_v22  ;;  %905 = vmatpush1.bf16.msra.mxu1 %v1700_v23  ;;  %v1763_v8 = vld [vmem:[%s2413_s30 + $0xe4] ss:$16 sps:$4 sm:$0xff]   ;;  %v1766_v9 = vld [vmem:[%s2413_s30 + $0xec] ss:$16 sps:$4 sm:$0xff]   ;;  %v1761_v11 = vld [vmem:[%s2413_s30 + $0xe0] ss:$16 sps:$4 sm:$0xff]  }
  0xa9   : > { %865 = vmatprep.subr.bf16.mxu0 %v1701_v24  ;;  %906 = vmatprep.subr.bf16.mxu1 %v1703_v25  ;;  %v1764_v12 = vld [vmem:[%s2413_s30 + $0xe8] ss:$16 sps:$4 sm:$0xff]   ;;  %v1769_v13 = vld [vmem:[%s2413_s30 + $0xc4] ss:$16 sps:$4 sm:$0xff]   ;;  %v1772_v14 = vld [vmem:[%s2413_s30 + $0xcc] ss:$16 sps:$4 sm:$0xff]  }
  0xaa   : > { %v1767_v15 = vld [vmem:[%s2413_s30 + $0xc0] ss:$16 sps:$4 sm:$0xff]   ;;  %v1770_v16 = vld [vmem:[%s2413_s30 + $0xc8] ss:$16 sps:$4 sm:$0xff]   ;;  %v1775_v17 = vld [vmem:[%s2413_s30 + $0xa4] ss:$16 sps:$4 sm:$0xff]  }
  0xab   : > { %v1778_v18 = vld [vmem:[%s2413_s30 + $0xac] ss:$16 sps:$4 sm:$0xff]   ;;  %v2073_v19 = vmov 0   ;;  %v1773_v20 = vld [vmem:[%s2413_s30 + $0xa0] ss:$16 sps:$4 sm:$0xff]   ;;  %p416_p7 = scmp.lt.s32.totalorder %s1470_s20, 7 }
  0xac   : > { %866 = vmatpush1.bf16.msra.mxu0 %v1705_v26  ;;  %907 = vmatpush1.bf16.msra.mxu1 %v1706_v27  ;;  %v1776_v21 = vld [vmem:[%s2413_s30 + $0xa8] ss:$16 sps:$4 sm:$0xff]   ;;  %v1781_v22 = vld [vmem:[%s2413_s30 + $0x84] ss:$16 sps:$4 sm:$0xff]   ;;  %v1784_v23 = vld [vmem:[%s2413_s30 + $0x8c] ss:$16 sps:$4 sm:$0xff]  }
  0xad   : > { %867 = vmatprep.subr.bf16.mxu0 %v1707_v28  ;;  %908 = vmatprep.subr.bf16.mxu1 %v1709_v29  ;;  %v1779_v24 = vld [vmem:[%s2413_s30 + $0x80] ss:$16 sps:$4 sm:$0xff]   ;;  %v1782_v25 = vld [vmem:[%s2413_s30 + $0x88] ss:$16 sps:$4 sm:$0xff]   ;;  %v1787_v26 = vld [vmem:[%s2413_s30 + $0x64] ss:$16 sps:$4 sm:$0xff]  }
  0xae   : > { %v1790_v27 = vld [vmem:[%s2413_s30 + $0x6c] ss:$16 sps:$4 sm:$0xff]   ;;  %v1785_v28 = vld [vmem:[%s2413_s30 + $0x60] ss:$16 sps:$4 sm:$0xff]   ;;  %v1788_v29 = vld [vmem:[%s2413_s30 + $0x68] ss:$16 sps:$4 sm:$0xff]  }
  0xaf   : > { %v1797_v36 = vld [vmem:[%s2413_s30 + $0x20] ss:$16 sps:$4 sm:$0xff]   ;;  %s2611_s20 = smov (!%p416_p7, %s1470_s20), 7  ;;  %s1468_s17 = sshll.u32 %s2350_s22, 3 }
  0xb0   : > { %868 = vmatpush1.bf16.msra.mxu0 %v1711_v30  ;;  %909 = vmatpush1.bf16.msra.mxu1 %v1712_v31  ;;  %v1793_v30 = vld [vmem:[%s2413_s30 + $0x44] ss:$16 sps:$4 sm:$0xff]   ;;  %v1796_v31 = vld [vmem:[%s2413_s30 + $0x4c] ss:$16 sps:$4 sm:$0xff]   ;;  %s418_s2 = scalar_lea.vmem %s2560_s5, %s2611_s20  ;;  %s1573_s10 = sshll.u32 %s2137_s28, 7 }
  0xb1   : > { %869 = vmatprep.subr.bf16.mxu0 %v1713_v32  ;;  %910 = vmatprep.subr.bf16.mxu1 %v1715_v33  ;;  %v1791_v32 = vld [vmem:[%s2413_s30 + $0x40] ss:$16 sps:$4 sm:$0xff]   ;;  %v1794_v33 = vld [vmem:[%s2413_s30 + $0x48] ss:$16 sps:$4 sm:$0xff]   ;;  %s412_s18 = scalar_lea.vmem [#allocation11], %s1468_s17  ;;  %s2492_s19 = scalar_lea.hbm %s2562_s7, %s1573_s10 }
  0xb2   : > { %s1284_s8 = sshll.u32 %s412_s18, 4  ;;  %s1258_s0 = scalar_lea.sflag [#allocation12], %s2350_s22  ;;  %s2494_s8 = int_to_ptr.vmem [resolvable:$true] %s1284_s8 }
  0xb3   : > { %s1961_s14 = scalar_lea.vmem %s2494_s8, 128  ;;  %p2602_p9 = scmp.ne.s32.totalorder %s2581_s12, 0 }
  0xb4   : > { %870 = vmatpush2.bf16.msra.mxu0 %v1717_v34  ;;  %911 = vmatpush2.bf16.msra.mxu1 %v1718_v35  ;;  %v1799_v34 = vld [vmem:[%s2413_s30 + $0x24] ss:$16 sps:$4 sm:$0xff]   ;;  %v1802_v35 = vld [vmem:[%s2413_s30 + $0x2c] ss:$16 sps:$4 sm:$0xff]   ;;  %p1962_p8 = scmp.ne.s32.totalorder %s2494_s8, %s1961_s14 }
  0xb5   : > { %871 = vmatprep.subr.bf16.mxu0 %v1719_v37  ;;  %912 = vmatprep.subr.bf16.mxu1 %v1721_v38  ;;  %v1800_v37 = vld [vmem:[%s2413_s30 + $0x28] ss:$16 sps:$4 sm:$0xff]   ;;  %v1805_v38 = vld [vmem:[%s2413_s30 + $0x4] ss:$16 sps:$4 sm:$0xff]  }
  0xb6   : > { %p1963_p13 = pnand %p1962_p8, %p2602_p9 }
  0xb8   : > { %872 = vmatpush2.bf16.msra.mxu0 %v1723_v39  ;;  %913 = vmatpush2.bf16.msra.mxu1 %v1724_v41  ;;  %v1808_v39 = vld [vmem:[%s2413_s30 + $0xc] ss:$16 sps:$4 sm:$0xff]   ;;  %v1803_v41 = vld [vmem:[%s2413_s30] ss:$16 sps:$4 sm:$0xff]   ;;  %p1964_p3 = pneg %p1963_p13 }
  0xb9   : > { %873 = vmatprep.subr.bf16.mxu0 %v1725_v42  ;;  %914 = vmatprep.subr.bf16.mxu1 %v1727_v43  ;;  %v1806_v42 = vld [vmem:[%s2413_s30 + $0x8] ss:$16 sps:$4 sm:$0xff]  }
  0xba   : > { %v421_v43 = vld [vmem:[#allocation2] sm:$0xff] }
  0xbc   : > { %874 = vmatpush2.bf16.msra.mxu0 %v1729_v44  ;;  %915 = vmatpush2.bf16.msra.mxu1 %v1730_v45  ;;  %v422_v44 = vpack.c.bf16 %v421_v43, %v421_v43 }
  0xbd   : > { %875 = vmatprep.subr.bf16.mxu0 %v1731_v47  ;;  %916 = vmatprep.subr.bf16.mxu1 %v1733_v48 }
  0xc0   : > { %876 = vmatpush2.bf16.msra.mxu0 %v1735_v50  ;;  %917 = vmatpush2.bf16.msra.mxu1 %v1736_v52 }
  0xc1   : > { %877 = vmatprep.subr.bf16.mxu0 %v1737_v53  ;;  %918 = vmatprep.subr.bf16.mxu1 %v1739_v54  ;;  %v1193_v54 = vld [vmem:[%s418_s2] sm:$0xf] }
  0xc4   : > { %878 = vmatpush2.bf16.msra.mxu0 %v1741_v56  ;;  %919 = vmatpush2.bf16.msra.mxu1 %v1742_v57  ;;  %v1198_v56 = vrot.slane %v1193_v54, %v2428_v1 }
  0xc5   : > { %879 = vmatprep.subr.bf16.mxu0 %v1743_v58  ;;  %920 = vmatprep.subr.bf16.mxu1 %v1745_v59 }
  0xc8   : > { %880 = vmatpush2.bf16.msra.mxu0 %v1747_v60  ;;  %921 = vmatpush2.bf16.msra.mxu1 %v1748_v61  ;;  %v1202_v61 = vrot.slane %v1193_v54, %v431_v46  ;;  %v1209_v46 = vsub.s32 3, %v2399_v40 }
  0xc9   : > { %881 = vmatprep.subr.bf16.mxu0 %v1749_v62  ;;  %922 = vmatprep.subr.bf16.mxu1 %v1751_v63 }
  0xcc   : > { %882 = vmatpush2.bf16.msra.mxu0 %v1753_v0  ;;  %923 = vmatpush2.bf16.msra.mxu1 %v1754_v2 }
  0xcd   : > { %883 = vmatprep.subr.bf16.mxu0 %v1755_v3  ;;  %924 = vmatprep.subr.bf16.mxu1 %v1757_v4 }
  0xd0   : > { %884 = vmatpush2.bf16.msra.mxu0 %v1759_v5  ;;  %925 = vmatpush2.bf16.msra.mxu1 %v1760_v7  ;;  %v1205_v7 = vsub.s32 2, %v2399_v40 }
  0xd1   : > { %1111 = vmatprep.subr.bf16.mxu0 %v1763_v8  ;;  %1152 = vmatprep.subr.bf16.mxu1 %v1766_v9 }
  0xd3   : > { %886 = vmatmul.mubr.bf16.vlgmr.msra.gmra.mxu0 %v435_v10  ;;  %927 = vmatmul.mubr.bf16.vlgmr.msra.gmra.mxu1 %v435_v10 }
  0xd4   : > { %1112 = vmatpush1.bf16.msra.mxu0 %v1761_v11  ;;  %1153 = vmatpush1.bf16.msra.mxu1 %v1764_v12 }
  0xd5   : > { %1113 = vmatprep.subr.bf16.mxu0 %v1769_v13  ;;  %1154 = vmatprep.subr.bf16.mxu1 %v1772_v14  ;;  %v1206_v13 = vrot.slane %v1193_v54, %v1205_v7 }
  0xd6   : > { %1143 = vmatprep.mubr.bf16.mxu0 %v2073_v19  ;;  %1184 = vmatprep.mubr.bf16.mxu1 %v2073_v19 }
  0xd8   : > { %1114 = vmatpush1.bf16.msra.mxu0 %v1767_v15  ;;  %1155 = vmatpush1.bf16.msra.mxu1 %v1770_v16 }
  0xd9   : > { %1115 = vmatprep.subr.bf16.mxu0 %v1775_v17  ;;  %1156 = vmatprep.subr.bf16.mxu1 %v1778_v18  ;;  %v1210_v17 = vrot.slane %v1193_v54, %v1209_v46 }
  0xdc   : > { %1116 = vmatpush1.bf16.msra.mxu0 %v1773_v20  ;;  %1157 = vmatpush1.bf16.msra.mxu1 %v1776_v21 }
  0xdd   : > { %1117 = vmatprep.subr.bf16.mxu0 %v1781_v22  ;;  %1158 = vmatprep.subr.bf16.mxu1 %v1784_v23 }
  0xe0   : > { %1118 = vmatpush1.bf16.msra.mxu0 %v1779_v24  ;;  %1159 = vmatpush1.bf16.msra.mxu1 %v1782_v25  ;;  %v1570_v24 = vld [vmem:[%s346_s29] ss:$0 sm:$0xff]  ;;  %s2074_s29 = smov [#allocation11]  }
  0xe1   : > { %1119 = vmatprep.subr.bf16.mxu0 %v1787_v26  ;;  %1160 = vmatprep.subr.bf16.mxu1 %v1790_v27  ;;  %s1965_s21 = sshll.u32 %s2074_s29, 4  ;;  %s1966_s21 = int_to_ptr.vmem [resolvable:$false] %s1965_s21 }
  0xe2   : > { %s1967_s9 = scalar_lea.vmem %s1966_s21, 256  ;;  %p1968_p10 = scmp.lt.s32.totalorder %s2494_s8, %s1966_s21 }
  0xe3   : > { %p1969_p1 = scmp.lt.s32.totalorder %s1967_s9, %s1961_s14 }
  0xe4   : > { %1120 = vmatpush1.bf16.msra.mxu0 %v1785_v28  ;;  %1161 = vmatpush1.bf16.msra.mxu1 %v1788_v29 }
  0xe5   : > { %1121 = vmatprep.subr.bf16.mxu0 %v1793_v30  ;;  %1162 = vmatprep.subr.bf16.mxu1 %v1796_v31  ;;  %p1970_p0 = por %p1969_p1, %p1968_p10 }
  0xe7   : > { %p1971_p12 = pnand %p1970_p0, %p1964_p3 }
  0xe8   : > { %1122 = vmatpush1.bf16.msra.mxu0 %v1791_v32  ;;  %1163 = vmatpush1.bf16.msra.mxu1 %v1794_v33 }
  0xe9   : > { %1123 = vmatprep.subr.bf16.mxu0 %v1799_v34  ;;  %1164 = vmatprep.subr.bf16.mxu1 %v1802_v35 }
  0xec   : > { %1124 = vmatpush1.bf16.msra.mxu0 %v1797_v36  ;;  %1165 = vmatpush1.bf16.msra.mxu1 %v1800_v37 }
  0xed   : > { %1125 = vmatprep.subr.bf16.mxu0 %v1805_v38  ;;  %1166 = vmatprep.subr.bf16.mxu1 %v1808_v39 }
  0xf0   : > { %1126 = vmatpush1.bf16.msra.mxu0 %v1803_v41  ;;  %1167 = vmatpush1.bf16.msra.mxu1 %v1806_v42 }
  0xf3   : > { %1144 = vmatmul.mubr.bf16.vlgmr.msra.gmra.mxu0 %v422_v44  ;;  %1185 = vmatmul.mubr.bf16.vlgmr.msra.gmra.mxu1 %v422_v44 }
 0x193   : > { %v887_v45 = vpop.f32.mrf.mxu0  ;;  %v928_v47 = vpop.f32.mrf.mxu1 }
 0x194   : > { %v938_v55 = vrot.slane %v887_v45, %v2428_v1  ;;  %v946_v11 = vrot.slane %v928_v47, %v2428_v1 }
 0x195   : > { %v889_v48 = vpop.f32.mrf.mxu0  ;;  %v930_v49 = vpop.f32.mrf.mxu1 }
 0x196   : > { %v942_v59 = vrot.slane %v889_v48, %v2428_v1  ;;  %v950_v14 = vrot.slane %v930_v49, %v2428_v1 }
 0x197   : > { %v891_v50 = vpop.f32.mrf.mxu0  ;;  %v932_v51 = vpop.f32.mrf.mxu1 }
 0x199   : > { %v892_v52 = vpop.f32.mrf.mxu0  ;;  %v933_v53 = vpop.f32.mrf.mxu1 }
 0x1b3   : > { %v1145_v57 = vpop.f32.mrf.mxu0  ;;  %v1186_v58 = vpop.f32.mrf.mxu1 }
 0x1b4   : > { %v1146_v60 = vadd.f32 %v1145_v57, %v938_v55  ;;  %v1187_v12 = vadd.f32 %v1186_v58, %v946_v11 }
 0x1b5   : > { %v1147_v62 = vpop.f32.mrf.mxu0  ;;  %v1188_v63 = vpop.f32.mrf.mxu1 }
 0x1b6   : > { %v1215_v0 = vadd.f32 %v1198_v56, %v1146_v60  ;;  %v1148_v2 = vadd.f32 %v1147_v62, %v942_v59  ;;  %v1217_v15 = vadd.f32 %v1206_v13, %v1187_v12  ;;  %v1189_v16 = vadd.f32 %v1188_v63, %v950_v14 }
 0x1b7   : > { %v1149_v3 = vpop.f32.mrf.mxu0  ;;  %v1190_v4 = vpop.f32.mrf.mxu1 }
 0x1b8   : > { %v1567_v5 = vmul.f32 -1.442695, %v1215_v0  ;;  %v1216_v6 = vadd.f32 %v1202_v61, %v1148_v2  ;;  %v1569_v18 = vmul.f32 -1.442695, %v1217_v15  ;;  %v1218_v20 = vadd.f32 %v1210_v17, %v1189_v16 }
 0x1b9   : > { %v1150_v8 = vpop.f32.mrf.mxu0  ;;  %v1191_v9 = vpop.f32.mrf.mxu1 }
 0x1ba   : > { %1809 = vpow2.f32 %v1567_v5  ;;  %v1568_v10 = vmul.f32 -1.442695, %v1216_v6 }
 0x1bc   : > { %1811 = vpow2.f32 %v1568_v10 }
 0x1bd   : > { %1813 = vpow2.f32 %v1569_v18 }
 0x1c7   : > { %v1810_v19 = vpop.eup %1809 }
 0x1c8   : > { %v1222_v21 = vadd.f32 1.0, %v1810_v19 }
 0x1c9   : > { %v1812_v22 = vpop.eup %1811 }
 0x1ca   : > { %1815 = vrcp.f32 %v1222_v21  ;;  %v1228_v23 = vadd.f32 1.0, %v1812_v22  ;;  %v1814_v40 = vpop.eup %1813 }
 0x1cb   : > { %1817 = vtanh.f32 %v1218_v20  ;;  %v1234_v27 = vadd.f32 1.0, %v1814_v40 }
 0x1cc   : > { %1819 = vrcp.f32 %v1228_v23 }
 0x1cd   : > { %1821 = vrcp.f32 %v1234_v27 }
 0x1d7   : > { %v1816_v1 = vpop.eup %1815 }
 0x1d8   : > { %v1818_v25 = vpop.eup %1817  ;;  %v1245_v28 = vmul.f32 %v1816_v1, %v1570_v24 }
 0x1d9   : > { %v1820_v26 = vpop.eup %1819 }
 0x1da   : > { %v1246_v29 = vmul.f32 %v1820_v26, %v1818_v25 }
 0x1dc   : > { %v1247_v30 = vadd.f32 %v1246_v29, %v1245_v28 }
 0x1de   : > { %1823 = vtanh.f32 %v1247_v30  ;;  %1248 = vst [vmem:[%s412_s18] sm:$0xff] %v1247_v30 }
 0x1df   : > { %1974 = shalt.err (!%p1971_p12)
}
 0x1e0   : > { %s1975_s11 = scalar_lea.hbm %s2492_s19, 128  ;;  %s1979_s16 = scalar_lea.hbm %s2562_s7, 256 }
 0x1e1   : > { %p1976_p5 = scmp.ne.s32.totalorder %s2492_s19, %s1975_s11  ;;  %p1980_p2 = scmp.lt.s32.totalorder %s2492_s19, %s2562_s7 }
 0x1e2   : > { %p1981_p6 = scmp.lt.s32.totalorder %s1979_s16, %s1975_s11 }
 0x1e3   : > { %p1977_p11 = pnand %p1976_p5, %p2602_p9 }
 0x1e4   : > { %p1982_p7 = por %p1981_p6, %p1980_p2 }
 0x1e5   : > { %p1978_p4 = pneg %p1977_p11 }
 0x1e7   : > { %p1983_p8 = pnand %p1982_p7, %p1978_p4 }
 0x1e9   : > { %1986 = shalt.err (!%p1983_p8)
}
 0x1ea   : > { %1594 = dma.vmem_to_hbm [thread:$0]  (%p2602_p9), %s2494_s8, 128, %s2492_s19, %s1258_s0   ;;  %v1822_v31 = vpop.eup %1821 }
 0x1eb   : > { %s405_s18 = scalar_lea.vmem [#allocation10], %s1468_s17  ;;  %v1824_v32 = vpop.eup %1823  ;;  %s1269_s29 = scalar_lea.hbm %s2561_s6, %s1573_s10 }
 0x1ec   : > { %s1271_s15 = sshll.u32 %s405_s18, 4  ;;  %v1250_v33 = vmul.f32 %v1824_v32, %v1822_v31  ;;  %s1253_s21 = scalar_lea.sflag [#allocation4], %s2350_s22  ;;  %s1272_s15 = int_to_ptr.vmem [resolvable:$true] %s1271_s15 }
 0x1ed   : > { %s1987_s9 = scalar_lea.vmem %s1272_s15, 128  ;;  %s2075_s8 = smov [#allocation10]  }
 0x1ee   : > { %1251 = vst [vmem:[%s405_s18] sm:$0xff] %v1250_v33  ;;  %p1988_p13 = scmp.ne.s32.totalorder %s1272_s15, %s1987_s9  ;;  %s1991_s19 = sshll.u32 %s2075_s8, 4  ;;  %s1992_s19 = int_to_ptr.vmem [resolvable:$false] %s1991_s19 }
 0x1ef   : > { %s1993_s17 = scalar_lea.vmem %s1992_s19, 256  ;;  %p1994_p1 = scmp.lt.s32.totalorder %s1272_s15, %s1992_s19 }
 0x1f0   : > { %p1989_p3 = pnand %p1988_p13, %p2602_p9  ;;  %p1995_p0 = scmp.lt.s32.totalorder %s1993_s17, %s1987_s9 }
 0x1f2   : > { %p1990_p10 = pneg %p1989_p3  ;;  %p1996_p12 = por %p1995_p0, %p1994_p1 }
 0x1f4   : > { %p1997_p5 = pnand %p1996_p12, %p1990_p10 }
 0x1f6   : > { %2000 = shalt.err (!%p1997_p5)
}
 0x1f7   : > { %s2001_s28 = scalar_lea.hbm %s1269_s29, 128  ;;  %s2005_s0 = scalar_lea.hbm %s2561_s6, 256 }
 0x1f8   : > { %p2002_p11 = scmp.ne.s32.totalorder %s1269_s29, %s2001_s28  ;;  %p2006_p6 = scmp.lt.s32.totalorder %s1269_s29, %s2561_s6 }
 0x1f9   : > { %p2007_p7 = scmp.lt.s32.totalorder %s2005_s0, %s2001_s28 }
 0x1fa   : > { %p2003_p4 = pnand %p2002_p11, %p2602_p9 }
 0x1fb   : > { %p2008_p8 = por %p2007_p7, %p2006_p6 }
 0x1fc   : > { %p2004_p2 = pneg %p2003_p4 }
 0x1fe   : > { %p2009_p13 = pnand %p2008_p8, %p2004_p2 }
 0x200   : > { %2012 = shalt.err (!%p2009_p13)
}
 0x201   : > { %1593 = dma.vmem_to_hbm [thread:$0]  (%p2602_p9), %s1272_s15, 128, %s1269_s29, %s1253_s21  }
 0x202 PF: > { %s1296_s20 = sand.u32 1, %s2051_s24   ;;  %p2603_p3 = scmp.ne.s32.totalorder %s2582_s13, 0 }
 0x203   : > { %p2604_p10 = scmp.ge.s32.totalorder %s2063_s27, 2  ;;  %s1297_s16 = scalar_lea.sflag [#allocation4], %s1296_s20 }
 0x205   : > { %p1615_p1 = pnand %p2604_p10, %p2603_p3 }
 0x207   : > { %p1616_p0 = pneg %p1615_p1 }
 0x209   : > { %2042 = dma.done.wait (%p1616_p0), %s1297_s16, 128  }
 0x20a   : > { %2044 = vsyncadd (%p1616_p0), %s1297_s16, 4294967168  ;;  %s1306_s23 = scalar_lea.sflag [#allocation12], %s1296_s20 }
 0x20b   : > { %2046 = dma.done.wait (%p1616_p0), %s1306_s23, 128  }
 0x20c   : > { %2048 = vsyncadd (%p1616_p0), %s1306_s23, 4294967168  ;;  %s2605_s27 = sld [smem:[#allocation19_spill]]  ;;  %s2608_s24 = smov %s2055_s25 }
 0x20d   : > { %s2606_s2 = sld [smem:[#allocation18_spill]] }
 0x20e   : > { %s2607_s26 = sld [smem:[#allocation20_spill]] }
 0x212   : > { %p23_p9 = scmp.ge.s32.totalorder %s2605_s27, 4  }
 0x213   : > { %s2609_s25 = smov %s2606_s2 }
 0x214   :  { %25 = sbr.rel (!%p23_p9) target bundleno = 10 (0xa), region = 138 }
 0x219   :  { %1311 = vsyncpa [#allocation3], 1 }
 0x21a   :  { %1313 = vsyncpa [#allocation3 + $0x1], 1 }
 0x21b   :  { %1314 = vsyncpa [#allocation6], 1 }
 0x21c   :  { %1315 = vsyncpa [#allocation4], 1 }
 0x21d   :  { %1317 = vsyncpa [#allocation4 + $0x1], 1 }
 0x21e   :  { %1318 = vsyncpa [#allocation12], 1 }
 0x21f   :  { %1320 = vsyncpa [#allocation12 + $0x1], 1 }

</bundles_post_ra>
